<compile_context>
chip_gen: v5e
topology: v5e:2x2
jax: 0.10.0
libtpu: 0.0.40
codegen_flags: <defaults>
</compile_context>

<pallas_src>
import jax
import jax.numpy as jnp
from jax.experimental import pallas as pl
from jax.experimental.pallas import tpu as pltpu

_TILE_N = 4096      # rows per grid step (multiple of 8); 4096*128*4 B = 2 MiB
_SPLIT_ROWS = 1024  # if N >= this, force >=2 grid steps (two TCs on v7x)


def _round_up(x, m):
    return (x + m - 1) // m * m


def _pick_tile(n_rows, tile_n):
    """Row-tile: <= tile_n, multiple of 8, and >=2 tiles once N is sizeable."""
    tile = min(_round_up(tile_n, 8), n_rows)
    if n_rows >= _SPLIT_ROWS:
        tile = min(tile, _round_up((n_rows + 1) // 2, 8))
    return max(tile, 8)


def _lookup_logits(idx_ref, table_ref):
    """Embedding lookup as a one-hot matmul on the MXU (exact: one term/row)."""
    tile_n = idx_ref.shape[0]
    V = table_ref.shape[1]
    idx = idx_ref[...]                                            # (tile_n, 1) i32
    col = jax.lax.broadcasted_iota(jnp.int32, (tile_n, V), 1)     # (tile_n, V)
    onehot = (idx == col).astype(table_ref.dtype)                 # exact in bf16
    logits = jnp.dot(onehot, table_ref[...],
                     preferred_element_type=jnp.float32)          # (tile_n, V) f32
    return logits, col


def _ce_partial(n_valid_ref, tgt_ref, logits, col):
    """Masked per-tile cross-entropy partial sum (f32 scalar)."""
    tile_n = logits.shape[0]
    tgt = tgt_ref[...]                                            # (tile_n, 1) i32
    row_max = jnp.max(logits, axis=-1, keepdims=True)
    lse = row_max + jnp.log(
        jnp.sum(jnp.exp(logits - row_max), axis=-1, keepdims=True))
    tgt_logit = jnp.sum(jnp.where(tgt == col, logits, 0.0),
                        axis=-1, keepdims=True)                   # select+reduce
    per_row = lse - tgt_logit                                     # (tile_n, 1)
    # Mask rows past the real N (row padding / clipped last block).
    row0 = pl.program_id(0) * tile_n
    row_global = row0 + jax.lax.broadcasted_iota(jnp.int32, (tile_n, 1), 0)
    return jnp.sum(jnp.where(row_global < n_valid_ref[0], per_row, 0.0))


def _store_partial(loss_ref, partial):
    """One lane-dense (8,128) block per tile: partial at [0,0], zeros elsewhere."""
    r = jax.lax.broadcasted_iota(jnp.int32, (8, 128), 0)
    c = jax.lax.broadcasted_iota(jnp.int32, (8, 128), 1)
    loss_ref[...] = jnp.where((r == 0) & (c == 0), partial,
                              0.0).astype(loss_ref.dtype)


def _logits_loss_kernel(n_valid_ref, idx_ref, tgt_ref, table_ref,
                        logits_ref, loss_ref):
    logits, col = _lookup_logits(idx_ref, table_ref)
    logits_ref[...] = logits.astype(logits_ref.dtype)
    _store_partial(loss_ref, _ce_partial(n_valid_ref, tgt_ref, logits, col))


def _loss_only_kernel(n_valid_ref, idx_ref, tgt_ref, table_ref, loss_ref):
    logits, col = _lookup_logits(idx_ref, table_ref)
    _store_partial(loss_ref, _ce_partial(n_valid_ref, tgt_ref, logits, col))


def _logits_kernel(idx_ref, table_ref, logits_ref):
    logits, _ = _lookup_logits(idx_ref, table_ref)
    logits_ref[...] = logits.astype(logits_ref.dtype)


def bigram_forward(idx, table, targets=None, *, mxu_dtype=jnp.float32,
                   logits_dtype=jnp.float32, tile_n=_TILE_N,
                   return_logits=True):
    """Mirrors BigramModel.forward.

    idx: (B, T) int, table: (V, V) f32, targets: optional (B, T) int.
      targets is None          -> (logits (B, T, V), None)
      targets given            -> (logits (B*T, V), scalar f32 loss)
      targets given, return_logits=False -> (None, loss)   [skips logits HBM write]

    mxu_dtype=jnp.bfloat16 runs the one-hot matmul in bf16 (table rounded to
    bf16, one-hot exact; CE math stays f32).  Defaults preserve f32 numerics.
    """
    B, T = idx.shape
    V = table.shape[0]
    N = B * T
    r8 = _round_up(N, 8)                  # row padding only when N % 8 != 0
    tile = _pick_tile(r8, tile_n)
    num_tiles = pl.cdiv(r8, tile)

    idx_flat = idx.reshape(N, 1).astype(jnp.int32)
    if r8 != N:
        idx_flat = jnp.pad(idx_flat, ((0, r8 - N), (0, 0)))
    table_in = table.astype(mxu_dtype)

    row_spec = pl.BlockSpec((tile, 1), lambda i: (i, 0))
    table_spec = pl.BlockSpec((V, V), lambda i: (0, 0))       # grid-invariant
    logits_spec = pl.BlockSpec((tile, V), lambda i: (i, 0))
    loss_spec = pl.BlockSpec((8, 128), lambda i: (i, 0))      # disjoint per tile
    compiler_params = pltpu.CompilerParams(
        dimension_semantics=("parallel",))    # row tiles shard across v7x TCs

    if targets is None:
        logits = pl.pallas_call(
            _logits_kernel,
            grid=(num_tiles,),
            in_specs=[row_spec, table_spec],
            out_specs=logits_spec,
            out_shape=jax.ShapeDtypeStruct((r8, V), logits_dtype),
            compiler_params=compiler_params,
        )(idx_flat, table_in)
        if r8 != N:
            logits = logits[:N]
        return logits.reshape(B, T, V), None

    tgt_flat = targets.reshape(N, 1).astype(jnp.int32)
    if r8 != N:
        tgt_flat = jnp.pad(tgt_flat, ((0, r8 - N), (0, 0)))
    n_valid = jnp.array([N], jnp.int32)
    smem_spec = pl.BlockSpec(memory_space=pltpu.MemorySpace.SMEM)
    loss_shape = jax.ShapeDtypeStruct((num_tiles * 8, 128), jnp.float32)

    if return_logits:
        logits, partials = pl.pallas_call(
            _logits_loss_kernel,
            grid=(num_tiles,),
            in_specs=[smem_spec, row_spec, row_spec, table_spec],
            out_specs=(logits_spec, loss_spec),
            out_shape=(jax.ShapeDtypeStruct((r8, V), logits_dtype), loss_shape),
            compiler_params=compiler_params,
        )(n_valid, idx_flat, tgt_flat, table_in)
        loss = jnp.sum(partials) / N      # cross-tile reduction (masked pad = 0)
        if r8 != N:
            logits = logits[:N]
        return logits, loss

    partials = pl.pallas_call(
        _loss_only_kernel,
        grid=(num_tiles,),
        in_specs=[smem_spec, row_spec, row_spec, table_spec],
        out_specs=loss_spec,
        out_shape=loss_shape,
        compiler_params=compiler_params,
    )(n_valid, idx_flat, tgt_flat, table_in)
    return None, jnp.sum(partials) / N


def reference_forward(idx, table, targets):
    N = idx.shape[0] * idx.shape[1]
    logits = table[idx.reshape(-1)]                               # (N, V)
    lse = jax.nn.logsumexp(logits, axis=-1)
    tgt_logit = jnp.take_along_axis(
        logits, targets.reshape(N, 1), axis=-1)[:, 0]
    return logits, jnp.mean(lse - tgt_logit)


if __name__ == "__main__":
    key = jax.random.PRNGKey(0)
    ks = jax.random.split(key, 8)

    # --- Small char-vocab case (B=2, T=8, V=65), f32, with targets ----------
    V = 65
    table = jax.random.normal(ks[0], (V, V), jnp.float32)   # nn.Embedding ~ N(0,1)
    B, T = 2, 8
    idx = jax.random.randint(ks[1], (B, T), 0, V, jnp.int32)
    targets = jax.random.randint(ks[2], (B, T), 0, V, jnp.int32)

    logits, loss = bigram_forward(idx, table, targets)
    jax.block_until_ready((logits, loss))
    ref_logits, ref_loss = reference_forward(idx, table, targets)
    assert logits.shape == (B * T, V)
    assert jnp.allclose(logits, ref_logits, rtol=1e-5, atol=1e-5)
    assert jnp.allclose(loss, ref_loss, rtol=1e-4, atol=1e-4)

    # --- No-targets path (PyTorch: logits (B, T, C), loss None) -------------
    logits_nt, loss_nt = bigram_forward(idx, table)
    jax.block_until_ready(logits_nt)
    assert logits_nt.shape == (B, T, V) and loss_nt is None
    assert jnp.allclose(logits_nt.reshape(B * T, V), ref_logits,
                        rtol=1e-5, atol=1e-5)

    # --- N % 8 != 0 (pad + slice fallback path) ------------------------------
    B3, T3 = 3, 7                                    # N = 21 -> padded to 24
    idx3 = jax.random.randint(ks[3], (B3, T3), 0, V, jnp.int32)
    tgt3 = jax.random.randint(ks[4], (B3, T3), 0, V, jnp.int32)
    logits3, loss3 = bigram_forward(idx3, table, tgt3)
    jax.block_until_ready(loss3)
    ref_logits3, ref_loss3 = reference_forward(idx3, table, tgt3)
    assert logits3.shape == (B3 * T3, V)
    assert jnp.allclose(logits3, ref_logits3, rtol=1e-5, atol=1e-5)
    assert jnp.allclose(loss3, ref_loss3, rtol=1e-4, atol=1e-4)

    # --- Multi-tile grid with a clipped partial last block -------------------
    V2 = 128
    table2 = jax.random.normal(ks[5], (V2, V2), jnp.float32)
    B2, T2 = 4, 300                       # N = 1200, tile_n=512 -> 3 tiles (last 176 rows)
    idx2 = jax.random.randint(ks[6], (B2, T2), 0, V2, jnp.int32)
    tgt2 = jax.random.randint(ks[7], (B2, T2), 0, V2, jnp.int32)
    logits2, loss2 = bigram_forward(idx2, table2, tgt2, tile_n=512)
    jax.block_until_ready(loss2)
    ref_logits2, ref_loss2 = reference_forward(idx2, table2, tgt2)
    assert logits2.shape == (B2 * T2, V2)
    assert jnp.allclose(logits2, ref_logits2, rtol=1e-5, atol=1e-5)
    assert jnp.allclose(loss2, ref_loss2, rtol=1e-4, atol=1e-4)

    # --- Loss-only mode (skips the (N, V) logits HBM writeback) -------------
    none_logits, loss_only = bigram_forward(idx2, table2, tgt2, tile_n=512,
                                            return_logits=False)
    jax.block_until_ready(loss_only)
    assert none_logits is None
    assert jnp.allclose(loss_only, ref_loss2, rtol=1e-4, atol=1e-4)

    # --- bf16 MXU path (v6e/v7x): exact vs bf16-rounded table ---------------
    logits_bf, loss_bf = bigram_forward(idx2, table2, tgt2, tile_n=512,
                                        mxu_dtype=jnp.bfloat16)
    jax.block_until_ready(loss_bf)
    table2_bf = table2.astype(jnp.bfloat16).astype(jnp.float32)
    ref_logits_bf, ref_loss_bf = reference_forward(idx2, table2_bf, tgt2)
    assert jnp.allclose(logits_bf, ref_logits_bf, rtol=1e-5, atol=1e-5)
    assert jnp.allclose(loss_bf, ref_loss_bf, rtol=1e-4, atol=1e-4)

    # TODO(synk): generate() (autoregressive multinomial sampling loop) is
    # host-side control flow, not a kernel hot path; omitted.
    print("KERNEL_OK")
</pallas_src>

<mosaic_0001>
module attributes {stable_mosaic.version = 11 : i64} {
  func.func @_logits_loss_kernel(%arg0: i32, %arg1: memref<1xi32, #tpu.memory_space<smem>>, %arg2: memref<16x1xi32, #tpu.memory_space<vmem>>, %arg3: memref<16x1xi32, #tpu.memory_space<vmem>>, %arg4: memref<65x65xf32, #tpu.memory_space<vmem>>, %arg5: memref<16x65xf32, #tpu.memory_space<vmem>>, %arg6: memref<8x128xf32, #tpu.memory_space<vmem>>) attributes {dimension_semantics = [#tpu.dimension_semantics<parallel>], iteration_bounds = array<i64: 1>, scalar_prefetch = 0 : i64, scratch_operands = 0 : i64, tpu.core_type = #tpu.core_type<tc>, window_params = [{transform_indices = @transform_0, window_bounds = array<i64: 1>}, {transform_indices = @transform_1, window_bounds = array<i64: 16, 1>}, {transform_indices = @transform_2, window_bounds = array<i64: 16, 1>}, {pipeline_mode = #tpu.pipeline_mode<synchronous>, transform_indices = @transform_3, window_bounds = array<i64: 65, 65>}, {transform_indices = @transform_4, window_bounds = array<i64: 16, 65>}, {transform_indices = @transform_5, window_bounds = array<i64: 8, 128>}]} {
    %c0 = arith.constant 0 : index
    %c0_0 = arith.constant 0 : index
    %0 = vector.load %arg2[%c0, %c0_0] : memref<16x1xi32, #tpu.memory_space<vmem>>, vector<16x1xi32>
    %1 = tpu.iota {dimensions = array<i32: 1>} : vector<16x65xi32>
    %2 = vector.broadcast %0 : vector<16x1xi32> to vector<16x65xi32>
    %3 = arith.cmpi eq, %2, %1 : vector<16x65xi32>
    %4 = arith.extui %3 : vector<16x65xi1> to vector<16x65xi32>
    %5 = arith.sitofp %4 : vector<16x65xi32> to vector<16x65xf32>
    %c0_1 = arith.constant 0 : index
    %c0_2 = arith.constant 0 : index
    %6 = vector.load %arg4[%c0_1, %c0_2] : memref<65x65xf32, #tpu.memory_space<vmem>>, vector<65x65xf32>
    %cst = arith.constant dense<0.000000e+00> : vector<16x65xf32>
    %7 = tpu.matmul %5, %6, %cst {dimension_numbers = #tpu.dot_dimension_numbers<[1], [0], [0], [1], [0, 0, 1, 1], [], []>} : vector<16x65xf32>, vector<65x65xf32>, vector<16x65xf32> -> vector<16x65xf32>
    %c0_3 = arith.constant 0 : index
    %c0_4 = arith.constant 0 : index
    %8 = vector.load %arg5[%c0_3, %c0_4] : memref<16x65xf32, #tpu.memory_space<vmem>>, vector<16x65xf32>
    tpu.vector_store %arg5[%c0_3, %c0_4], %7 {strides = array<i32>} : memref<16x65xf32, #tpu.memory_space<vmem>>, vector<16x65xf32>,
    %c0_5 = arith.constant 0 : index
    %c0_6 = arith.constant 0 : index
    %9 = vector.load %arg3[%c0_5, %c0_6] : memref<16x1xi32, #tpu.memory_space<vmem>>, vector<16x1xi32>
    %cst_7 = arith.constant dense<0xFF800000> : vector<16xf32>
    %10 = vector.multi_reduction <maximumf>, %7, %cst_7 [1] : vector<16x65xf32> to vector<16xf32>
    %11 = vector.shape_cast %10 : vector<16xf32> to vector<16x1xf32>
    %12 = vector.broadcast %11 : vector<16x1xf32> to vector<16x65xf32>
    %13 = arith.subf %7, %12 : vector<16x65xf32>
    %14 = math.exp %13 : vector<16x65xf32>
    %cst_8 = arith.constant dense<0.000000e+00> : vector<16xf32>
    %15 = vector.multi_reduction <add>, %14, %cst_8 [1] : vector<16x65xf32> to vector<16xf32>
    %16 = vector.shape_cast %15 : vector<16xf32> to vector<16x1xf32>
    %17 = math.log %16 : vector<16x1xf32>
    %18 = arith.addf %11, %17 : vector<16x1xf32>
    %19 = vector.broadcast %9 : vector<16x1xi32> to vector<16x65xi32>
    %20 = arith.cmpi eq, %19, %1 : vector<16x65xi32>
    %cst_9 = arith.constant 0.000000e+00 : f32
    %21 = vector.broadcast %cst_9 : f32 to vector<16x65xf32>
    %22 = arith.select %20, %7, %21 : vector<16x65xi1>, vector<16x65xf32>
    %cst_10 = arith.constant dense<0.000000e+00> : vector<16xf32>
    %23 = vector.multi_reduction <add>, %22, %cst_10 [1] : vector<16x65xf32> to vector<16xf32>
    %24 = vector.shape_cast %23 : vector<16xf32> to vector<16x1xf32>
    %25 = arith.subf %18, %24 : vector<16x1xf32>
    %c16_i32 = arith.constant 16 : i32
    %26 = arith.muli %arg0, %c16_i32 : i32
    %27 = tpu.iota {dimensions = array<i32: 0>} : vector<16x1xi32>
    %28 = vector.broadcast %26 : i32 to vector<16x1xi32>
    %29 = arith.addi %28, %27 : vector<16x1xi32>
    %c0_11 = arith.constant 0 : index
    %30 = memref.load %arg1[%c0_11] : memref<1xi32, #tpu.memory_space<smem>>
    %31 = vector.broadcast %30 : i32 to vector<16x1xi32>
    %32 = arith.cmpi slt, %29, %31 : vector<16x1xi32>
    %cst_12 = arith.constant 0.000000e+00 : f32
    %33 = vector.broadcast %cst_12 : f32 to vector<16x1xf32>
    %34 = arith.select %32, %25, %33 : vector<16x1xi1>, vector<16x1xf32>
    %35 = vector.shape_cast %34 : vector<16x1xf32> to vector<1x16x1xf32>
    %cst_13 = arith.constant dense<0.000000e+00> : vector<1xf32>
    %36 = vector.multi_reduction <add>, %35, %cst_13 [1, 2] : vector<1x16x1xf32> to vector<1xf32>
    %37 = vector.shape_cast %36 : vector<1xf32> to vector<1x1x1xf32>
    %38 = vector.extract %37[0, 0, 0] : f32 from vector<1x1x1xf32>
    %39 = tpu.iota {dimensions = array<i32: 0>} : vector<8x128xi32>
    %40 = tpu.iota {dimensions = array<i32: 1>} : vector<8x128xi32>
    %c0_i32 = arith.constant 0 : i32
    %41 = vector.broadcast %c0_i32 : i32 to vector<8x128xi32>
    %42 = arith.cmpi eq, %39, %41 : vector<8x128xi32>
    %c0_i32_14 = arith.constant 0 : i32
    %43 = vector.broadcast %c0_i32_14 : i32 to vector<8x128xi32>
    %44 = arith.cmpi eq, %40, %43 : vector<8x128xi32>
    %45 = arith.andi %42, %44 : vector<8x128xi1>
    %cst_15 = arith.constant 0.000000e+00 : f32
    %46 = vector.broadcast %38 : f32 to vector<8x128xf32>
    %47 = vector.broadcast %cst_15 : f32 to vector<8x128xf32>
    %48 = arith.select %45, %46, %47 : vector<8x128xi1>, vector<8x128xf32>
    %c0_16 = arith.constant 0 : index
    %c0_17 = arith.constant 0 : index
    %49 = vector.load %arg6[%c0_16, %c0_17] : memref<8x128xf32, #tpu.memory_space<vmem>>, vector<8x128xf32>
    tpu.vector_store %arg6[%c0_16, %c0_17], %48 {strides = array<i32>} : memref<8x128xf32, #tpu.memory_space<vmem>>, vector<8x128xf32>,
    return
  }
  func.func @transform_0(%arg0: i32) -> i32 {
    %c0_i32 = arith.constant 0 : i32
    %c0_i32_0 = arith.constant 0 : i32
    return %c0_i32 : i32
  }
  func.func @transform_1(%arg0: i32) -> (i32, i32) {
    %c0_i32 = arith.constant 0 : i32
    %c0_i32_0 = arith.constant 0 : i32
    return %arg0, %c0_i32 : i32, i32
  }
  func.func @transform_2(%arg0: i32) -> (i32, i32) {
    %c0_i32 = arith.constant 0 : i32
    %c0_i32_0 = arith.constant 0 : i32
    return %arg0, %c0_i32 : i32, i32
  }
  func.func @transform_3(%arg0: i32) -> (i32, i32) {
    %c0_i32 = arith.constant 0 : i32
    %c0_i32_0 = arith.constant 0 : i32
    %c0_i32_1 = arith.constant 0 : i32
    return %c0_i32, %c0_i32_0 : i32, i32
  }
  func.func @transform_4(%arg0: i32) -> (i32, i32) {
    %c0_i32 = arith.constant 0 : i32
    %c0_i32_0 = arith.constant 0 : i32
    return %arg0, %c0_i32 : i32, i32
  }
  func.func @transform_5(%arg0: i32) -> (i32, i32) {
    %c0_i32 = arith.constant 0 : i32
    %c0_i32_0 = arith.constant 0 : i32
    return %arg0, %c0_i32 : i32, i32
  }
}

</mosaic_0001>

<bundles_post_ra>
// kernel: tpu_custom_call.1
= control target key start
LH: loop header
LB: loop body
LE: loop exit
PB: predicated region body
PF: predicated region fallthrough
CT: control target
= control target key end

     0   :  { %12 = vsyncpa [#allocation4], 0  ;;  %s405_s0 = inlined_call_operand.<no memory space> [shape: s32[1], index: 0, kind: input, shape index: {}]   ;;  %s406_s1 = inlined_call_operand.vmem [shape: s32[16,1], index: 1, kind: input, shape index: {}]   ;;  %s407_s2 = inlined_call_operand.vmem [shape: s32[16,1], index: 2, kind: input, shape index: {}]   ;;  %s408_s3 = inlined_call_operand.hbm [shape: f32[65,65], index: 3, kind: input, shape index: {}]   ;;  %s409_s4 = inlined_call_operand.hbm [shape: f32[16,65], index: 4, kind: output, shape index: {0}]   ;;  %s410_s5 = inlined_call_operand.hbm [shape: f32[8,128], index: 5, kind: output, shape index: {1}]  }
   0x1   :  { %13 = vsyncpa [#allocation5], 0 }
   0x2   :  { %14 = vsyncpa [#allocation8], 0  ;;  %s25_s20 = sshll.u32 %s408_s3, 4  ;;  %s321_s21 = smov [#allocation3]   ;;  %s26_s20 = int_to_ptr.hbm [resolvable:$true] %s25_s20 }
   0x3   :  { %s27_s22 = sshll.u32 %s321_s21, 4  ;;  %s322_s23 = smov 128   ;;  %s28_s22 = int_to_ptr.vmem [resolvable:$true] %s27_s22 }
   0x4   :  { %s323_s24 = smov 8  }
   0x5   :  { %33 = dma.hbm_to_vmem [thread:$0]  %s26_s20, 1152, %s28_s22, [#allocation4], %s322_s23, %s322_s23, %s323_s24  }
   0x6   :  { %315 = dma.done.wait [#allocation4], 1152  }
   0x7   :  { %316 = vsyncadd [#allocation4], 4294966144  ;;  %v324_v0 = vmov 0   ;;  %vm70_vm0 = vcmask 1040384   ;;  %v38_v1 = vld [vmem:[%s406_s1] sm:$0xff]  ;;  %v61_v3 = vld [vmem:[#allocation3 + $0x38] sm:$0xff]  ;;  %v40_v14 = vlaneseq  ;;  %v151_v47 = vstv %s405_s0 }
   0x8   :  { %233 = vset.pattern.permute.xlu0 %v324_v0  ;;  %234 = vset.pattern.permute.xlu2 %v324_v0  ;;  %v62_v2 = vld [vmem:[#allocation3 + $0x40] sm:$0x1]  ;;  %v60_v4 = vld [vmem:[#allocation3 + $0x30] sm:$0xff]  ;;  %v59_v5 = vld [vmem:[#allocation3 + $0x28] sm:$0xff]  ;;  %vm63_vm1 = vcmask 531456   ;;  %v325_v17 = vmov 0.0  }
   0x9   :  { %43 = vperm.xlu0 %233, %v38_v1   ;;  %212 = vmatpush.msk.msra.mxu0 %vm70_vm0, %v62_v2  ;;  %v39_v6 = vld [vmem:[%s406_s1 + $0x8] sm:$0xff]  ;;  %v58_v7 = vld [vmem:[#allocation3 + $0x20] sm:$0xff]  ;;  %v57_v8 = vld [vmem:[#allocation3 + $0x18] sm:$0xff]  ;;  %v376_v15 = vand.u32 127, %v40_v14  ;;  %v145_v46 = vshrl.u32 %v40_v14, 7  ;;  %vm156_vm8 = vcmask 7168  }
   0xa   :  { %215 = vmatpush.msk.msra.mxu1 %vm70_vm0, %v62_v2  ;;  %v56_v9 = vld [vmem:[#allocation3 + $0x10] sm:$0xff]  ;;  %v55_v10 = vld [vmem:[#allocation3 + $0x8] sm:$0xff]  ;;  %v54_v11 = vld [vmem:[#allocation3] sm:$0xff]  ;;  %s326_s7 = smov [#allocation6]   ;;  %s181_s10 = sshll.u32 %s409_s4, 4  ;;  %s182_s10 = int_to_ptr.hbm [resolvable:$true] %s181_s10 }
   0xb   :  { %82 = vmatpush.msra.mxu0 %v61_v3  ;;  %v99_v12 = vld [vmem:[%s407_s2] sm:$0xff]  ;;  %v100_v13 = vld [vmem:[%s407_s2 + $0x8] sm:$0xff]  ;;  %v146_v50 = vadd.s32 8, %v145_v46  ;;  %vm152_vm6 = vcmp.lt.s32.totalorder %v145_v46, %v151_v47  ;;  %s179_s8 = sshll.u32 %s326_s7, 4  ;;  %vm169_vm9 = vcmp.eq.s32.totalorder %v145_v46, 0  ;;  %vm170_vm10 = vcmp.eq.s32.totalorder %v376_v15, 0  ;;  %s180_s8 = int_to_ptr.vmem [resolvable:$true] %s179_s8 }
   0xc   :  { %216 = vmatpush.msra.mxu1 %v61_v3  ;;  %126 = vperm.xlu2 %234, %v99_v12   ;;  %s327_s11 = smov [#allocation7]   ;;  %s195_s14 = sshll.u32 %s410_s5, 4  ;;  %vm171_vm11 = vmand %vm169_vm9, %vm170_vm10  ;;  %s196_s14 = int_to_ptr.hbm [resolvable:$true] %s195_s14 }
   0xd   :  { %83 = vmatpush.msra.mxu0 %v60_v4  ;;  %vm153_vm7 = vcmp.lt.s32.totalorder %v146_v50, %v151_v47  ;;  %s193_s12 = sshll.u32 %s327_s11, 4  ;;  %s194_s12 = int_to_ptr.vmem [resolvable:$true] %s193_s12 }
   0xe   :  { %217 = vmatpush.msra.mxu1 %v60_v4 }
   0xf   :  { %84 = vmatpush.msra.mxu0 %v59_v5 }
  0x10   :  { %218 = vmatpush.msra.mxu1 %v59_v5 }
  0x11   :  { %46 = vperm.xlu0 %233, %v39_v6   ;;  %85 = vmatpush.msra.mxu0 %v58_v7 }
  0x12   :  { %219 = vmatpush.msra.mxu1 %v58_v7 }
  0x13   :  { %86 = vmatpush.msra.mxu0 %v57_v8 }
  0x14   :  { %220 = vmatpush.msra.mxu1 %v57_v8  ;;  %129 = vperm.xlu2 %234, %v100_v13  }
  0x15   :  { %87 = vmatpush.msra.mxu0 %v56_v9 }
  0x16   :  { %221 = vmatpush.msra.mxu1 %v56_v9 }
  0x17   :  { %88 = vmatpush.msra.mxu0 %v55_v10 }
  0x18   :  { %222 = vmatpush.msra.mxu1 %v55_v10 }
  0x19   :  { %89 = vmatpush.msra.mxu0 %v54_v11 }
  0x1a   :  { %223 = vmatpush.msra.mxu1 %v54_v11 }
  0x66   :  { %v127_v21 = vpop.permute.xlu2 %126 }
  0x67   :  { %vm131_vm4 = vcmp.eq.s32.totalorder %v127_v21, %v376_v15 }
  0x6e   :  { %v130_v37 = vpop.permute.xlu2 %129 }
  0x6f   :  { %vm132_vm5 = vcmp.eq.s32.totalorder %v130_v37, %v376_v15 }
  0x7b   :  { %v44_v16 = vpop.permute.xlu0 %43 }
  0x7c   :  { %vm48_vm2 = vcmp.eq.s32.totalorder %v44_v16, %v376_v15 }
  0x7d   :  { %v210_v18 = vsel %vm48_vm2, 1.0, %v325_v17 }
  0x7e   :  { %213 = vmatmul.msk.f32.vlgmr.msra.gmra.mxu0 %vm63_vm1, %v210_v18 }
  0x83   :  { %v47_v19 = vpop.permute.xlu0 %46 }
  0x84   :  { %vm49_vm3 = vcmp.eq.s32.totalorder %v47_v19, %v376_v15 }
  0x85   :  { %v211_v20 = vsel %vm49_vm3, 1.0, %v325_v17 }
  0x86   :  { %214 = vmatmul.msk.f32.vlgmr.msra.gmra.mxu1 %vm63_vm1, %v211_v20 }
  0xfb   :  { %v91_v22 = vpop.f32.mrf.mxu0 }
  0xfc   :  { %97 = vst.msk [vmem:[#allocation6] sm:$0xff] %vm63_vm1, %v91_v22  ;;  %v101_v23 = vsel %vm63_vm1, %v91_v22, -inf  ;;  %v133_v24 = vsel %vm131_vm4, %v91_v22, 0.0 }
  0xfd   :  { %102 = vmax.xlane.f32.xlu1 %v101_v23  ;;  %v135_v25 = vsel %vm63_vm1, %v133_v24, 0.0 }
  0xfe   :  { %136 = vadd.xlane.f32.xlu2 %v135_v25 }
 0x103   :  { %v94_v26 = vpop.f32.mrf.mxu1 }
 0x104   :  { %98 = vst.msk [vmem:[#allocation6 + $0x8] sm:$0xff] %vm63_vm1, %v94_v26  ;;  %v104_v27 = vsel %vm63_vm1, %v94_v26, -inf  ;;  %v134_v39 = vsel %vm132_vm5, %v94_v26, 0.0 }
 0x105   :  { %105 = vmax.xlane.f32.xlu1 %v104_v27  ;;  %v138_v40 = vsel %vm63_vm1, %v134_v39, 0.0  ;;  %187 = dma.vmem_to_hbm [thread:$0]  %s180_s8, 256, %s182_s10, [#allocation5], %s322_s23, %s322_s23, %s323_s24  }
 0x170   :  { %v103_v28 = vpop.xlane.xlu1 %102 }
 0x171   :  { %v107_v29 = vsub.f32 %v91_v22, %v103_v28  ;;  %v137_v49 = vpop.xlane.xlu2 %136 }
 0x173   :  { %v109_v30 = vmul.f32 1.442695, %v107_v29 }
 0x175   :  { %235 = vpow2.f32 %v109_v30 }
 0x178   :  { %v106_v31 = vpop.xlane.xlu1 %105 }
 0x179   :  { %v108_v32 = vsub.f32 %v94_v26, %v106_v31 }
 0x17b   :  { %v236_v33 = vpop.eup %235  ;;  %v111_v34 = vmul.f32 1.442695, %v108_v32 }
 0x17c   :  { %v113_v35 = vsel %vm63_vm1, %v236_v33, 0.0 }
 0x17d   :  { %237 = vpow2.f32 %v111_v34  ;;  %114 = vadd.xlane.f32.xlu0 %v113_v35 }
 0x183   :  { %v238_v36 = vpop.eup %237 }
 0x184   :  { %v116_v38 = vsel %vm63_vm1, %v238_v36, 0.0 }
 0x185   :  { %117 = vadd.xlane.f32.xlu1 %v116_v38 }
 0x18d   :  { %139 = vadd.xlane.f32.xlu1 %v138_v40 }
 0x1f0   :  { %v115_v41 = vpop.xlane.xlu0 %114 }
 0x1f1   :  { %239 = vlog2.f32 %v115_v41 }
 0x1f7   :  { %v240_v42 = vpop.eup %239 }
 0x1f8   :  { %v120_v43 = vmul.f32 0.6931472, %v240_v42  ;;  %v118_v44 = vpop.xlane.xlu1 %117 }
 0x1f9   :  { %241 = vlog2.f32 %v118_v44 }
 0x1fa   :  { %v123_v45 = vadd.f32 %v120_v43, %v103_v28 }
 0x1fc   :  { %v141_v52 = vsub.f32 %v123_v45, %v137_v49 }
 0x1fe   :  { %v154_v56 = vsel %vm152_vm6, %v141_v52, 0.0 }
 0x1ff   :  { %v242_v48 = vpop.eup %241  ;;  %v157_v58 = vsel %vm156_vm8, %v154_v56, 0.0 }
 0x200   :  { %v122_v51 = vmul.f32 0.6931472, %v242_v48  ;;  %v140_v54 = vpop.xlane.xlu1 %139 }
 0x202   :  { %v124_v53 = vadd.f32 %v122_v51, %v106_v31 }
 0x204   :  { %v142_v55 = vsub.f32 %v124_v53, %v140_v54 }
 0x206   :  { %v155_v57 = vsel %vm153_vm7, %v142_v55, 0.0 }
 0x207   :  { %v158_v59 = vsel %vm156_vm8, %v155_v57, 0.0 }
 0x208   :  { %v159_v60 = vadd.f32 %v158_v59, %v157_v58 }
 0x20a   :  { %160 = vadd.xlane.f32.xlu1 %v159_v60 }
 0x27d   :  { %v161_v61 = vpop.xlane.xlu1 %160 }
 0x27e   :  { %v162_v62 = vrot.slane %v161_v61, 4 }
 0x280   :  { %v163_v63 = vadd.f32 %v162_v62, %v161_v61 }
 0x282   :  { %v164_v0 = vrot.slane %v163_v63, 2 }
 0x284   :  { %v165_v1 = vadd.f32 %v164_v0, %v163_v63 }
 0x286   :  { %v166_v2 = vrot.slane %v165_v1, 1 }
 0x288   :  { %v167_v3 = vadd.f32 %v166_v2, %v165_v1 }
 0x28a   :  { %224 = vpush %v167_v3 }
 0x2bb   :  { %s225_s15 = spop %224 }
 0x2bc   :  { %v172_v4 = vstv %s225_s15 }
 0x2bd   :  { %v173_v5 = vsel %vm171_vm11, %v172_v4, 0.0 }
 0x2be   :  { %174 = vst [vmem:[#allocation7] sm:$0xff] %v173_v5 }
 0x2bf   :  { %198 = dma.vmem_to_hbm [thread:$0]  %s194_s12, 128, %s196_s14, [#allocation8]  }
 0x2c0   :  { %317 = dma.done.wait [#allocation5], 256  }
 0x2c1   :  { %318 = vsyncadd [#allocation5], 4294967040 }
 0x2c2   :  { %319 = dma.done.wait [#allocation8], 128  }
 0x2c3   :  { %320 = vsyncadd [#allocation8], 4294967168 }
 0x2c4   :  { %207 = vsyncpa [#allocation4], 1 }
 0x2c5   :  { %208 = vsyncpa [#allocation5], 1 }
 0x2c6   :  { %209 = vsyncpa [#allocation8], 1 }

</bundles_post_ra>
